<compile_context>
chip_gen: v7x
topology: tpu7x:2x2x1
jax: 0.10.0
libtpu: 0.0.40
codegen_flags: <defaults>
</compile_context>

<pallas_src>
import jax
import jax.numpy as jnp
from jax.experimental import pallas as pl
from jax.experimental.pallas import tpu as pltpu

KH = KW = 3
FEAT_DIM = 512   # resnet18 basenet.output_num()
N_CLASS = 2
LANE = 128


def _round_up(x, m):
    return (x + m - 1) // m * m


def _pick_hw_tile(hw, max_tile):
    """Largest divisor of hw that is <= max_tile and sublane-friendly."""
    if hw <= max_tile:
        return hw
    for t in range(min(max_tile, hw), 0, -1):
        if hw % t == 0 and t % 8 == 0:
            return t
    return hw


def _feature_kernel(patches_ref, wconv_ref, bconv_ref, pooler_ref, fea_ref):
    # patches_ref: (Bb, THW, Kpad) bf16     wconv_ref: (Kpad, FEAT) bf16
    # bconv_ref:   (1, FEAT) f32            pooler_ref: (Bb, Bb*THW) f32
    # fea_ref:     (Bb, FEAT) f32 output, resident across the HW (reduction) axis
    hw = pl.program_id(1)

    @pl.when(hw == 0)
    def _():
        fea_ref[...] = jnp.zeros_like(fea_ref)

    bb, thw, kp = patches_ref.shape
    x = patches_ref[...].reshape(bb * thw, kp)                        # bf16
    conv = jnp.dot(x, wconv_ref[...],
                   preferred_element_type=jnp.float32)                # f32 [bb*thw, FEAT]
    conv = jnp.maximum(conv + bconv_ref[...], 0.0)                    # bias + ReLU (f32)
    # Partial GAP as a matmul on the MXU: block-diagonal (1/HW) pooler.
    fea_ref[...] += jnp.dot(pooler_ref[...], conv,
                            preferred_element_type=jnp.float32)       # [Bb, FEAT]


def _im2col(x_nchw, k_pad, kh=KH, kw=KW):
    """3x3, stride 1, pad 1 patches: NCHW -> [B, H*W, k_pad] (K zero-padded)."""
    # TODO(synk): for large images, fuse im2col into the kernel (9 shifted taps)
    # to avoid the 9x HBM expansion; fine for small toy inputs.
    B, C, H, W = x_nchw.shape
    xp = jnp.pad(x_nchw, ((0, 0), (0, 0), (1, 1), (1, 1)))
    cols = [xp[:, :, i:i + H, j:j + W] for i in range(kh) for j in range(kw)]
    p = jnp.stack(cols, axis=2)                                       # [B, C, 9, H, W]
    p = p.transpose(0, 3, 4, 1, 2).reshape(B, H * W, C * kh * kw)     # [B, HW, K]
    k = C * kh * kw
    if k_pad > k:
        p = jnp.pad(p, ((0, 0), (0, 0), (0, k_pad - k)))
    return p


def init_params(key, c_in):
    k1, k2, k3, k4 = jax.random.split(key, 4)
    K = c_in * KH * KW
    wconv = jax.random.normal(k1, (K, FEAT_DIM), jnp.float32) * 0.05
    bconv = jax.random.normal(k2, (1, FEAT_DIM), jnp.float32) * 0.01
    wfc = jax.random.normal(k3, (FEAT_DIM, N_CLASS), jnp.float32) * 0.05
    bfc = jax.random.normal(k4, (1, N_CLASS), jnp.float32) * 0.01
    return wconv, bconv, wfc, bfc


def my_model_forward(x_nchw, params):
    wconv, bconv, wfc, bfc = params
    B, C, H, W = x_nchw.shape
    HW = H * W
    K = C * KH * KW
    Kpad = max(LANE, _round_up(K, LANE))

    # bf16 matmul operands (zeros in padded K rows/cols contribute nothing).
    patches = _im2col(x_nchw, Kpad).astype(jnp.bfloat16)              # [B, HW, Kpad]
    wconv_p = jnp.pad(wconv, ((0, Kpad - K), (0, 0))).astype(jnp.bfloat16)

    # Batch blocking: amortize per-step overhead, but keep >=2 grid points on
    # the (parallel) batch axis so v7x's 2 TensorCores both get work.
    Bb = max(1, min(8, B // 2))
    while B % Bb:
        Bb -= 1
    nB = B // Bb

    # HW reduction tiling keeps the [Bb*THW, 512] f32 intermediate small in VMEM.
    THW = _pick_hw_tile(HW, max(256, 2048 // Bb))
    n_hw = HW // THW

    # Block-diagonal (1/HW) pooler: GAP partial sums as a matmul.
    pooler = jnp.kron(jnp.eye(Bb, dtype=jnp.float32),
                      jnp.full((1, THW), 1.0 / HW, jnp.float32))      # [Bb, Bb*THW]

    fea = pl.pallas_call(
        _feature_kernel,
        out_shape=jax.ShapeDtypeStruct((nB, Bb, FEAT_DIM), jnp.float32),
        grid=(nB, n_hw),
        in_specs=[
            pl.BlockSpec((Bb, THW, Kpad), lambda b, h: (b, h, 0)),
            pl.BlockSpec((Kpad, FEAT_DIM), lambda b, h: (0, 0)),
            pl.BlockSpec((1, FEAT_DIM), lambda b, h: (0, 0)),
            pl.BlockSpec((Bb, Bb * THW), lambda b, h: (0, 0)),
        ],
        out_specs=pl.BlockSpec((None, Bb, FEAT_DIM), lambda b, h: (b, 0, 0)),
        compiler_params=pltpu.CompilerParams(
            dimension_semantics=("parallel", "arbitrary"),
            vmem_limit_bytes=32 * 1024 * 1024),
    )(patches, wconv_p, bconv, pooler)

    fea = fea.reshape(B, FEAT_DIM)                                    # [B, 512] lane-dense
    # FC hoisted out of the kernel: avoids a near-empty MXU pass and masked
    # 2-wide stores per grid step.
    pred = fea @ wfc + bfc
    return pred                                                       # logits [B, n_class]


def _reference_forward(x_nchw, params):
    """Pure-JAX f32 reference of the same stand-in forward."""
    wconv, bconv, wfc, bfc = params
    B, C, H, W = x_nchw.shape
    K = C * KH * KW
    patches = _im2col(x_nchw, K)                                      # [B, HW, K] f32
    conv = jnp.maximum(jnp.einsum('bpk,kf->bpf', patches, wconv) + bconv, 0.0)
    fea = conv.mean(axis=1)                                           # [B, FEAT]
    return fea @ wfc + bfc


if __name__ == "__main__":
    key = jax.random.PRNGKey(0)
    kx, kp = jax.random.split(key)

    B, C, H, W = 2, 3, 16, 16
    x = jax.random.normal(kx, (B, C, H, W), jnp.float32)              # NCHW input
    params = init_params(kp, C)

    pred = jax.jit(my_model_forward)(x, params)
    jax.block_until_ready(pred)

    assert pred.shape == (B, N_CLASS), pred.shape
    assert pred.dtype == jnp.float32

    ref = _reference_forward(x, params)
    assert jnp.allclose(pred, ref, atol=1e-2, rtol=1e-2), (pred, ref)

    print("KERNEL_OK")
</pallas_src>

<mosaic_0001>
module attributes {stable_mosaic.version = 11 : i64} {
  func.func @_feature_kernel(%arg0: i32, %arg1: i32, %arg2: memref<1x256x128xbf16, #tpu.memory_space<vmem>>, %arg3: memref<128x512xbf16, #tpu.memory_space<vmem>>, %arg4: memref<1x512xf32, #tpu.memory_space<vmem>>, %arg5: memref<1x256xf32, #tpu.memory_space<vmem>>, %arg6: memref<1x1x512xf32, #tpu.memory_space<vmem>>) attributes {dimension_semantics = [#tpu.dimension_semantics<parallel>, #tpu.dimension_semantics<arbitrary>], iteration_bounds = array<i64: 2, 1>, scalar_prefetch = 0 : i64, scratch_operands = 0 : i64, tpu.core_type = #tpu.core_type<tc>, window_params = [{transform_indices = @transform_0, window_bounds = array<i64: 1, 256, 128>}, {pipeline_mode = #tpu.pipeline_mode<synchronous>, transform_indices = @transform_1, window_bounds = array<i64: 128, 512>}, {pipeline_mode = #tpu.pipeline_mode<synchronous>, transform_indices = @transform_2, window_bounds = array<i64: 1, 512>}, {pipeline_mode = #tpu.pipeline_mode<synchronous>, transform_indices = @transform_3, window_bounds = array<i64: 1, 256>}, {transform_indices = @transform_4, window_bounds = array<i64: 1, 1, 512>}]} {
    %c0_i32 = arith.constant 0 : i32
    %0 = arith.cmpi eq, %arg1, %c0_i32 : i32
    %1 = arith.extui %0 : i1 to i32
    %c0_i32_0 = arith.constant 0 : i32
    %2 = arith.cmpi ne, %1, %c0_i32_0 : i32
    scf.if %2 {
      %cst_17 = arith.constant 0.000000e+00 : f32
      %20 = vector.broadcast %cst_17 : f32 to vector<1x512xf32>
      %c0_18 = arith.constant 0 : index
      %c0_19 = arith.constant 0 : index
      %c0_20 = arith.constant 0 : index
      %21 = vector.load %arg6[%c0_18, %c0_19, %c0_20] : memref<1x1x512xf32, #tpu.memory_space<vmem>>, vector<1x1x512xf32>
      %22 = vector.shape_cast %21 : vector<1x1x512xf32> to vector<1x512xf32>
      %23 = vector.shape_cast %20 : vector<1x512xf32> to vector<1x1x512xf32>
      tpu.vector_store %arg6[%c0_18, %c0_19, %c0_20], %23 {strides = array<i32>} : memref<1x1x512xf32, #tpu.memory_space<vmem>>, vector<1x1x512xf32>,
    } else {
    }
    %c0 = arith.constant 0 : index
    %c0_1 = arith.constant 0 : index
    %c0_2 = arith.constant 0 : index
    %3 = vector.load %arg2[%c0, %c0_1, %c0_2] : memref<1x256x128xbf16, #tpu.memory_space<vmem>>, vector<1x256x128xbf16>
    %4 = vector.shape_cast %3 : vector<1x256x128xbf16> to vector<256x128xbf16>
    %c0_3 = arith.constant 0 : index
    %c0_4 = arith.constant 0 : index
    %5 = vector.load %arg3[%c0_3, %c0_4] : memref<128x512xbf16, #tpu.memory_space<vmem>>, vector<128x512xbf16>
    %cst = arith.constant dense<0.000000e+00> : vector<256x512xf32>
    %6 = tpu.matmul %4, %5, %cst {dimension_numbers = #tpu.dot_dimension_numbers<[1], [0], [0], [1], [0, 0, 1, 1], [], []>} : vector<256x128xbf16>, vector<128x512xbf16>, vector<256x512xf32> -> vector<256x512xf32>
    %c0_5 = arith.constant 0 : index
    %c0_6 = arith.constant 0 : index
    %7 = vector.load %arg4[%c0_5, %c0_6] : memref<1x512xf32, #tpu.memory_space<vmem>>, vector<1x512xf32>
    %8 = vector.broadcast %7 : vector<1x512xf32> to vector<256x512xf32>
    %9 = arith.addf %6, %8 : vector<256x512xf32>
    %cst_7 = arith.constant 0.000000e+00 : f32
    %10 = vector.broadcast %cst_7 : f32 to vector<256x512xf32>
    %11 = arith.maximumf %9, %10 : vector<256x512xf32>
    %c0_8 = arith.constant 0 : index
    %c0_9 = arith.constant 0 : index
    %c0_10 = arith.constant 0 : index
    %12 = vector.load %arg6[%c0_8, %c0_9, %c0_10] : memref<1x1x512xf32, #tpu.memory_space<vmem>>, vector<1x1x512xf32>
    %13 = vector.shape_cast %12 : vector<1x1x512xf32> to vector<1x512xf32>
    %c0_11 = arith.constant 0 : index
    %c0_12 = arith.constant 0 : index
    %14 = vector.load %arg5[%c0_11, %c0_12] : memref<1x256xf32, #tpu.memory_space<vmem>>, vector<1x256xf32>
    %cst_13 = arith.constant dense<0.000000e+00> : vector<1x512xf32>
    %15 = tpu.matmul %14, %11, %cst_13 {dimension_numbers = #tpu.dot_dimension_numbers<[1], [0], [0], [1], [0, 0, 1, 1], [], []>} : vector<1x256xf32>, vector<256x512xf32>, vector<1x512xf32> -> vector<1x512xf32>
    %16 = arith.addf %13, %15 : vector<1x512xf32>
    %c0_14 = arith.constant 0 : index
    %c0_15 = arith.constant 0 : index
    %c0_16 = arith.constant 0 : index
    %17 = vector.load %arg6[%c0_14, %c0_15, %c0_16] : memref<1x1x512xf32, #tpu.memory_space<vmem>>, vector<1x1x512xf32>
    %18 = vector.shape_cast %17 : vector<1x1x512xf32> to vector<1x512xf32>
    %19 = vector.shape_cast %16 : vector<1x512xf32> to vector<1x1x512xf32>
    tpu.vector_store %arg6[%c0_14, %c0_15, %c0_16], %19 {strides = array<i32>} : memref<1x1x512xf32, #tpu.memory_space<vmem>>, vector<1x1x512xf32>,
    return
  }
  func.func @transform_0(%arg0: i32, %arg1: i32) -> (i32, i32, i32) {
    %c0_i32 = arith.constant 0 : i32
    %c0_i32_0 = arith.constant 0 : i32
    return %arg0, %arg1, %c0_i32 : i32, i32, i32
  }
  func.func @transform_1(%arg0: i32, %arg1: i32) -> (i32, i32) {
    %c0_i32 = arith.constant 0 : i32
    %c0_i32_0 = arith.constant 0 : i32
    %c0_i32_1 = arith.constant 0 : i32
    return %c0_i32, %c0_i32_0 : i32, i32
  }
  func.func @transform_2(%arg0: i32, %arg1: i32) -> (i32, i32) {
    %c0_i32 = arith.constant 0 : i32
    %c0_i32_0 = arith.constant 0 : i32
    %c0_i32_1 = arith.constant 0 : i32
    return %c0_i32, %c0_i32_0 : i32, i32
  }
  func.func @transform_3(%arg0: i32, %arg1: i32) -> (i32, i32) {
    %c0_i32 = arith.constant 0 : i32
    %c0_i32_0 = arith.constant 0 : i32
    %c0_i32_1 = arith.constant 0 : i32
    return %c0_i32, %c0_i32_0 : i32, i32
  }
  func.func @transform_4(%arg0: i32, %arg1: i32) -> (i32, i32, i32) {
    %c0_i32 = arith.constant 0 : i32
    %c0_i32_0 = arith.constant 0 : i32
    %c0_i32_1 = arith.constant 0 : i32
    return %arg0, %c0_i32, %c0_i32_0 : i32, i32, i32
  }
}

</mosaic_0001>

<bundles_post_ra>
// kernel: my_model_forward.1
= control target key start
LH: loop header
LB: loop body
LE: loop exit
PB: predicated region body
PF: predicated region fallthrough
CT: control target
= control target key end

     0   :  { %s1677_s15 = smov 0   ;;  %s1679_s16 = smov 0   ;;  %s2031_s0 = inlined_call_operand.vmem [shape: bf16[2,256,128], index: 0, kind: input, shape index: {}]   ;;  %s2032_s1 = inlined_call_operand.vmem [shape: bf16[128,512], index: 1, kind: input, shape index: {}]   ;;  %s2033_s2 = inlined_call_operand.vmem [shape: f32[1,512], index: 2, kind: input, shape index: {}]   ;;  %s2034_s3 = inlined_call_operand.vmem [shape: f32[1,256], index: 3, kind: input, shape index: {}]   ;;  %s2035_s4 = inlined_call_operand.vmem [shape: f32[2,1,512], index: 4, kind: output, shape index: {}]  }
   0x1   :  { %s1681_s17 = smov 0  }
   0x2 LB: > { %s26_s18 = sadd.s32 1, %s1643_s16  ;;  %p1351_p0 = scmp.ge.s32.totalorder %s1647_s17, 1  ;;  %s1647_s17 = sphi %s1681_s17, %s14_s17   ;;  %s1643_s16 = sphi %s1679_s16, %s2039_s16   ;;  %s1639_s15 = sphi %s1677_s15, %s2038_s15  }
   0x3   : > { %p28_p1 = scmp.ge.s32.totalorder %s26_s18, 2  ;;  %p181_p2 = scmp.lt.s32.totalorder %s1647_s17, 3 }
   0x5   : > { %s2041_s18 = smov (%p28_p1, %s26_s18), 0  ;;  %p182_p3 = pnand %p1351_p0, %p181_p2 }
   0x6   : > { %v1561_v0 = vld [vmem:[%s2032_s1 + $0x4] ss:$16 sps:$4 sm:$0xff] (!%p182_p3)   ;;  %v1563_v1 = vld [vmem:[%s2032_s1 + $0xc] ss:$16 sps:$4 sm:$0xff] (!%p182_p3)   ;;  %v1649_v2 = vmov (!%p182_p3), 0   ;;  %p211_p4 = scmp.lt.s32.totalorder (!%p182_p3), %s1639_s15, 1  ;;  %v229_v49 = vlaneseq (!%p182_p3) }
   0x7   : > { %185 = sbr.rel (%p182_p3) target bundleno = 609 (0x261), region = 36  ;;  %608 = vmatprep.mubr.bf16.mxu0 (!%p182_p3), %v1649_v2  ;;  %801 = vmatprep.mubr.bf16.mxu1 (!%p182_p3), %v1649_v2  ;;  %v1565_v3 = vld [vmem:[%s2032_s1] ss:$16 sps:$4 sm:$0xff] (!%p182_p3)   ;;  %v1566_v4 = vld [vmem:[%s2032_s1 + $0x8] ss:$16 sps:$4 sm:$0xff] (!%p182_p3)  }
   0x8   : > { %576 = vmatprep.subr.bf16.mxu0 (!%p182_p3), %v1561_v0  ;;  %769 = vmatprep.subr.bf16.mxu1 (!%p182_p3), %v1563_v1  ;;  %v1567_v5 = vld [vmem:[%s2032_s1 + $0x24] ss:$16 sps:$4 sm:$0xff] (!%p182_p3)   ;;  %v1569_v6 = vld [vmem:[%s2032_s1 + $0x2c] ss:$16 sps:$4 sm:$0xff] (!%p182_p3)   ;;  %v1571_v7 = vld [vmem:[%s2032_s1 + $0x20] ss:$16 sps:$4 sm:$0xff] (!%p182_p3)  }
   0x9   : > { %577 = vmatpush1.bf16.msra.mxu0 (!%p182_p3), %v1565_v3  ;;  %770 = vmatpush1.bf16.msra.mxu1 (!%p182_p3), %v1566_v4  ;;  %v1572_v8 = vld [vmem:[%s2032_s1 + $0x28] ss:$16 sps:$4 sm:$0xff] (!%p182_p3)   ;;  %v1573_v9 = vld [vmem:[%s2032_s1 + $0x44] ss:$16 sps:$4 sm:$0xff] (!%p182_p3)   ;;  %v1575_v10 = vld [vmem:[%s2032_s1 + $0x4c] ss:$16 sps:$4 sm:$0xff] (!%p182_p3)  }
   0xa   : > { %578 = vmatprep.subr.bf16.mxu0 (!%p182_p3), %v1567_v5  ;;  %771 = vmatprep.subr.bf16.mxu1 (!%p182_p3), %v1569_v6  ;;  %v1577_v11 = vld [vmem:[%s2032_s1 + $0x40] ss:$16 sps:$4 sm:$0xff] (!%p182_p3)   ;;  %v1578_v12 = vld [vmem:[%s2032_s1 + $0x48] ss:$16 sps:$4 sm:$0xff] (!%p182_p3)   ;;  %v1579_v13 = vld [vmem:[%s2032_s1 + $0x64] ss:$16 sps:$4 sm:$0xff] (!%p182_p3)  }
   0xb   : > { %v1581_v14 = vld [vmem:[%s2032_s1 + $0x6c] ss:$16 sps:$4 sm:$0xff] (!%p182_p3)   ;;  %v1583_v15 = vld [vmem:[%s2032_s1 + $0x60] ss:$16 sps:$4 sm:$0xff] (!%p182_p3)   ;;  %v1584_v16 = vld [vmem:[%s2032_s1 + $0x68] ss:$16 sps:$4 sm:$0xff] (!%p182_p3)  }
   0xc   : > { %v1585_v17 = vld [vmem:[%s2032_s1 + $0x84] ss:$16 sps:$4 sm:$0xff] (!%p182_p3)   ;;  %v1587_v18 = vld [vmem:[%s2032_s1 + $0x8c] ss:$16 sps:$4 sm:$0xff] (!%p182_p3)   ;;  %v1589_v19 = vld [vmem:[%s2032_s1 + $0x80] ss:$16 sps:$4 sm:$0xff] (!%p182_p3)  }
   0xd   : > { %579 = vmatpush1.bf16.msra.mxu0 (!%p182_p3), %v1571_v7  ;;  %772 = vmatpush1.bf16.msra.mxu1 (!%p182_p3), %v1572_v8  ;;  %v1590_v20 = vld [vmem:[%s2032_s1 + $0x88] ss:$16 sps:$4 sm:$0xff] (!%p182_p3)   ;;  %v1591_v21 = vld [vmem:[%s2032_s1 + $0xa4] ss:$16 sps:$4 sm:$0xff] (!%p182_p3)   ;;  %v1593_v22 = vld [vmem:[%s2032_s1 + $0xac] ss:$16 sps:$4 sm:$0xff] (!%p182_p3)  }
   0xe   : > { %580 = vmatprep.subr.bf16.mxu0 %v1573_v9  ;;  %773 = vmatprep.subr.bf16.mxu1 %v1575_v10  ;;  %s2043_s15 = smov (!%p211_p4, %s1639_s15), 1  ;;  %v1595_v23 = vld [vmem:[%s2032_s1 + $0xa0] ss:$16 sps:$4 sm:$0xff]   ;;  %v1596_v24 = vld [vmem:[%s2032_s1 + $0xa8] ss:$16 sps:$4 sm:$0xff]   ;;  %v1852_v50 = vshrl.u32 %v229_v49, 7 }
   0xf   : > { %s1405_s19 = sshll.u32 %s2043_s15, 7  ;;  %v1597_v25 = vld [vmem:[%s2032_s1 + $0xc4] ss:$16 sps:$4 sm:$0xff]   ;;  %v1599_v26 = vld [vmem:[%s2032_s1 + $0xcc] ss:$16 sps:$4 sm:$0xff]   ;;  %s1354_s25 = sshll.u32 %s2043_s15, 2 }
  0x10   : > { %s1782_s28 = scalar_lea.vmem %s2031_s0, %s1405_s19  ;;  %v1601_v27 = vld [vmem:[%s2032_s1 + $0xc0] ss:$16 sps:$4 sm:$0xff]   ;;  %v1602_v28 = vld [vmem:[%s2032_s1 + $0xc8] ss:$16 sps:$4 sm:$0xff]   ;;  %v1603_v29 = vld [vmem:[%s2032_s1 + $0xe4] ss:$16 sps:$4 sm:$0xff]  }
  0x11   : > { %581 = vmatpush1.bf16.msra.mxu0 %v1577_v11  ;;  %774 = vmatpush1.bf16.msra.mxu1 %v1578_v12  ;;  %v1605_v30 = vld [vmem:[%s2032_s1 + $0xec] ss:$16 sps:$4 sm:$0xff]   ;;  %v1607_v31 = vld [vmem:[%s2032_s1 + $0xe0] ss:$16 sps:$4 sm:$0xff]   ;;  %v1608_v32 = vld [vmem:[%s2032_s1 + $0xe8] ss:$16 sps:$4 sm:$0xff]  }
  0x12   : > { %582 = vmatprep.subr.bf16.mxu0 %v1579_v13  ;;  %775 = vmatprep.subr.bf16.mxu1 %v1581_v14  ;;  %v1609_v33 = vld [vmem:[%s1782_s28] sm:$0xff]   ;;  %v1610_v34 = vld [vmem:[%s1782_s28 + $0x8] sm:$0xff]   ;;  %v1611_v35 = vld [vmem:[%s1782_s28 + $0x10] sm:$0xff]   ;;  %v302_v51 = vsub.s32 0, %v1852_v50  ;;  %v310_v52 = vsub.s32 2, %v1852_v50  ;;  %v306_v54 = vsub.s32 1, %v1852_v50 }
  0x13   : > { %v1612_v36 = vld [vmem:[%s1782_s28 + $0x18] sm:$0xff]   ;;  %v1613_v37 = vld [vmem:[%s1782_s28 + $0x20] sm:$0xff]   ;;  %v1614_v38 = vld [vmem:[%s1782_s28 + $0x28] sm:$0xff]   ;;  %v314_v55 = vsub.s32 3, %v1852_v50  ;;  %vm2013_vm0 = vcmp.lt.s32.totalorder %v229_v49, 512 }
  0x14   : > { %v1615_v39 = vld [vmem:[%s1782_s28 + $0x30] sm:$0xff]   ;;  %v1616_v40 = vld [vmem:[%s1782_s28 + $0x38] sm:$0xff]   ;;  %v1617_v41 = vld [vmem:[%s1782_s28 + $0x40] sm:$0xff]  }
  0x15   : > { %583 = vmatpush1.bf16.msra.mxu0 %v1583_v15  ;;  %776 = vmatpush1.bf16.msra.mxu1 %v1584_v16  ;;  %v1618_v42 = vld [vmem:[%s1782_s28 + $0x48] sm:$0xff]   ;;  %v1619_v43 = vld [vmem:[%s1782_s28 + $0x50] sm:$0xff]   ;;  %v1620_v44 = vld [vmem:[%s1782_s28 + $0x58] sm:$0xff]  }
  0x16   : > { %584 = vmatprep.subr.bf16.mxu0 %v1585_v17  ;;  %777 = vmatprep.subr.bf16.mxu1 %v1587_v18  ;;  %v1621_v45 = vld [vmem:[%s1782_s28 + $0x60] sm:$0xff]   ;;  %v1622_v46 = vld [vmem:[%s1782_s28 + $0x68] sm:$0xff]   ;;  %v1623_v47 = vld [vmem:[%s1782_s28 + $0x70] sm:$0xff]  }
  0x17   : > { %v1624_v48 = vld [vmem:[%s1782_s28 + $0x78] sm:$0xff]   ;;  %v298_v53 = vld [vmem:[%s2033_s2] sm:$0xf]  ;;  %s223_s28 = scalar_lea.vmem %s2035_s4, %s1354_s25 }
  0x18   : > { %v1863_v56 = vrot.slane %v298_v53, %v302_v51  ;;  %v1865_v57 = vrot.slane %v298_v53, %v310_v52  ;;  %v1867_v58 = vrot.slane %v298_v53, %v306_v54  ;;  %v1869_v59 = vrot.slane %v298_v53, %v314_v55  ;;  %v1878_v6 = vld [vmem:[%s2034_s3] sm:$0x3] }
  0x19   : > { %585 = vmatpush1.bf16.msra.mxu0 %v1589_v19  ;;  %778 = vmatpush1.bf16.msra.mxu1 %v1590_v20  ;;  %v1100_v17 = vrot.slane %v1878_v6, %v306_v54 }
  0x1a   : > { %586 = vmatprep.subr.bf16.mxu0 %v1591_v21  ;;  %779 = vmatprep.subr.bf16.mxu1 %v1593_v22 }
  0x1d   : > { %587 = vmatpush1.bf16.msra.mxu0 %v1595_v23  ;;  %780 = vmatpush1.bf16.msra.mxu1 %v1596_v24 }
  0x1e   : > { %588 = vmatprep.subr.bf16.mxu0 %v1597_v25  ;;  %781 = vmatprep.subr.bf16.mxu1 %v1599_v26 }
  0x21   : > { %589 = vmatpush1.bf16.msra.mxu0 %v1601_v27  ;;  %782 = vmatpush1.bf16.msra.mxu1 %v1602_v28 }
  0x22   : > { %590 = vmatprep.subr.bf16.mxu0 %v1603_v29  ;;  %783 = vmatprep.subr.bf16.mxu1 %v1605_v30 }
  0x25   : > { %591 = vmatpush1.bf16.msra.mxu0 %v1607_v31  ;;  %784 = vmatpush1.bf16.msra.mxu1 %v1608_v32 }
  0x28   : > { %609 = vmatmul.mubr.bf16.vlgmr.msra.gmra.mrb[0].mxu0 %v1609_v33  ;;  %802 = vmatmul.mubr.bf16.vlgmr.msra.gmra.mrb[0].mxu1 %v1609_v33 }
  0x29   : > { %618 = vmatprep.mubr.bf16.mxu0 %v1649_v2  ;;  %811 = vmatprep.mubr.bf16.mxu1 %v1649_v2 }
  0x30   : > { %619 = vmatmul.mubr.bf16.gmra.mrb[4].mxu0 %v1610_v34  ;;  %812 = vmatmul.mubr.bf16.gmra.mrb[4].mxu1 %v1610_v34 }
  0x31   : > { %628 = vmatprep.mubr.bf16.mxu0 %v1649_v2  ;;  %821 = vmatprep.mubr.bf16.mxu1 %v1649_v2 }
  0x38   : > { %629 = vmatmul.mubr.bf16.gmra.mrb[8].mxu0 %v1611_v35  ;;  %822 = vmatmul.mubr.bf16.gmra.mrb[8].mxu1 %v1611_v35 }
  0x39   : > { %638 = vmatprep.mubr.bf16.mxu0 %v1649_v2  ;;  %831 = vmatprep.mubr.bf16.mxu1 %v1649_v2 }
  0x40   : > { %639 = vmatmul.mubr.bf16.gmra.mrb[12].mxu0 %v1612_v36  ;;  %832 = vmatmul.mubr.bf16.gmra.mrb[12].mxu1 %v1612_v36 }
  0x41   : > { %648 = vmatprep.mubr.bf16.mxu0 %v1649_v2  ;;  %841 = vmatprep.mubr.bf16.mxu1 %v1649_v2 }
  0x48   : > { %649 = vmatmul.mubr.bf16.gmra.mrb[16].mxu0 %v1613_v37  ;;  %842 = vmatmul.mubr.bf16.gmra.mrb[16].mxu1 %v1613_v37 }
  0x49   : > { %658 = vmatprep.mubr.bf16.mxu0 %v1649_v2  ;;  %851 = vmatprep.mubr.bf16.mxu1 %v1649_v2 }
  0x50   : > { %659 = vmatmul.mubr.bf16.gmra.mrb[20].mxu0 %v1614_v38  ;;  %852 = vmatmul.mubr.bf16.gmra.mrb[20].mxu1 %v1614_v38 }
  0x51   : > { %668 = vmatprep.mubr.bf16.mxu0 %v1649_v2  ;;  %861 = vmatprep.mubr.bf16.mxu1 %v1649_v2 }
  0x58   : > { %669 = vmatmul.mubr.bf16.gmra.mrb[24].mxu0 %v1615_v39  ;;  %862 = vmatmul.mubr.bf16.gmra.mrb[24].mxu1 %v1615_v39 }
  0x59   : > { %678 = vmatprep.mubr.bf16.mxu0 %v1649_v2  ;;  %871 = vmatprep.mubr.bf16.mxu1 %v1649_v2 }
  0x60   : > { %679 = vmatmul.mubr.bf16.gmra.mrb[28].mxu0 %v1616_v40  ;;  %872 = vmatmul.mubr.bf16.gmra.mrb[28].mxu1 %v1616_v40 }
  0x61   : > { %688 = vmatprep.mubr.bf16.mxu0 %v1649_v2  ;;  %881 = vmatprep.mubr.bf16.mxu1 %v1649_v2 }
  0x68   : > { %689 = vmatmul.mubr.bf16.gmra.mrb[32].mxu0 %v1617_v41  ;;  %882 = vmatmul.mubr.bf16.gmra.mrb[32].mxu1 %v1617_v41 }
  0x69   : > { %698 = vmatprep.mubr.bf16.mxu0 %v1649_v2  ;;  %891 = vmatprep.mubr.bf16.mxu1 %v1649_v2 }
  0x70   : > { %699 = vmatmul.mubr.bf16.gmra.mrb[36].mxu0 %v1618_v42  ;;  %892 = vmatmul.mubr.bf16.gmra.mrb[36].mxu1 %v1618_v42 }
  0x71   : > { %708 = vmatprep.mubr.bf16.mxu0 %v1649_v2  ;;  %901 = vmatprep.mubr.bf16.mxu1 %v1649_v2 }
  0x78   : > { %709 = vmatmul.mubr.bf16.gmra.mrb[40].mxu0 %v1619_v43  ;;  %902 = vmatmul.mubr.bf16.gmra.mrb[40].mxu1 %v1619_v43 }
  0x79   : > { %718 = vmatprep.mubr.bf16.mxu0 %v1649_v2  ;;  %911 = vmatprep.mubr.bf16.mxu1 %v1649_v2 }
  0x80   : > { %719 = vmatmul.mubr.bf16.gmra.mrb[44].mxu0 %v1620_v44  ;;  %912 = vmatmul.mubr.bf16.gmra.mrb[44].mxu1 %v1620_v44 }
  0x81   : > { %728 = vmatprep.mubr.bf16.mxu0 %v1649_v2  ;;  %921 = vmatprep.mubr.bf16.mxu1 %v1649_v2 }
  0x88   : > { %729 = vmatmul.mubr.bf16.gmra.mrb[48].mxu0 %v1621_v45  ;;  %922 = vmatmul.mubr.bf16.gmra.mrb[48].mxu1 %v1621_v45 }
  0x89   : > { %738 = vmatprep.mubr.bf16.mxu0 %v1649_v2  ;;  %931 = vmatprep.mubr.bf16.mxu1 %v1649_v2 }
  0x90   : > { %739 = vmatmul.mubr.bf16.gmra.mrb[52].mxu0 %v1622_v46  ;;  %932 = vmatmul.mubr.bf16.gmra.mrb[52].mxu1 %v1622_v46 }
  0x91   : > { %748 = vmatprep.mubr.bf16.mxu0 %v1649_v2  ;;  %941 = vmatprep.mubr.bf16.mxu1 %v1649_v2 }
  0x98   : > { %749 = vmatmul.mubr.bf16.gmra.mrb[56].mxu0 %v1623_v47  ;;  %942 = vmatmul.mubr.bf16.gmra.mrb[56].mxu1 %v1623_v47 }
  0x99   : > { %758 = vmatprep.mubr.bf16.mxu0 %v1649_v2  ;;  %951 = vmatprep.mubr.bf16.mxu1 %v1649_v2 }
  0xa0   : > { %759 = vmatmul.mubr.bf16.gmra.mrb[60].mxu0 %v1624_v48  ;;  %952 = vmatmul.mubr.bf16.gmra.mrb[60].mxu1 %v1624_v48 }
  0xa1   : > { %1167 = vmatprep.mubr.f32.mxu0 %v1100_v17  ;;  %1238 = vmatprep.mubr.f32.mxu1 %v1100_v17 }
  0xfb   : > { %v610_v60 = vpop.f32.mrb[0].mxu0  ;;  %v803_v61 = vpop.f32.mrb[0].mxu1 }
  0xfc   : > { %v611_v62 = vadd.f32 %v610_v60, %v1863_v56  ;;  %v804_v63 = vadd.f32 %v803_v61, %v1865_v57  ;;  %v612_v0 = vpop.f32.mrb[1].mxu0  ;;  %v805_v1 = vpop.f32.mrb[1].mxu1 }
  0xfd   : > { %v613_v2 = vadd.f32 %v612_v0, %v1867_v58  ;;  %v806_v3 = vadd.f32 %v805_v1, %v1869_v59  ;;  %v614_v4 = vpop.f32.mrb[2].mxu0  ;;  %v807_v5 = vpop.f32.mrb[2].mxu1 }
  0xfe   : > { %v615_v7 = vadd.f32 %v614_v4, %v1863_v56  ;;  %v808_v8 = vadd.f32 %v807_v5, %v1865_v57  ;;  %v616_v9 = vpop.f32.mrb[3].mxu0  ;;  %v809_v10 = vpop.f32.mrb[3].mxu1  ;;  %v962_v11 = vmax.f32 %v611_v62, 0.0  ;;  %v964_v14 = vmax.f32 %v804_v63, 0.0 }
  0xff   : > { %v617_v12 = vadd.f32 %v616_v9, %v1867_v58  ;;  %v810_v13 = vadd.f32 %v809_v10, %v1869_v59  ;;  %v963_v18 = vmax.f32 %v613_v2, 0.0  ;;  %v965_v19 = vmax.f32 %v806_v3, 0.0 }
 0x100   : > { %v966_v15 = vmax.f32 %v615_v7, 0.0  ;;  %v968_v16 = vmax.f32 %v808_v8, 0.0 }
 0x101   : > { %v967_v20 = vmax.f32 %v617_v12, 0.0  ;;  %v969_v21 = vmax.f32 %v810_v13, 0.0 }
 0x102   : > { %v1408_v22 = vpack.c.bf16 %v966_v15, %v962_v11  ;;  %v1472_v23 = vpack.c.bf16 %v968_v16, %v964_v14 }
 0x103   : > { %v1406_v24 = vpack.c.bf16 %v967_v20, %v963_v18  ;;  %v1470_v25 = vpack.c.bf16 %v969_v21, %v965_v19  ;;  %v620_v26 = vpop.f32.mrb[4].mxu0  ;;  %v813_v27 = vpop.f32.mrb[4].mxu1 }
 0x104   : > { %v621_v28 = vadd.f32 %v620_v26, %v1863_v56  ;;  %v814_v29 = vadd.f32 %v813_v27, %v1865_v57  ;;  %v622_v30 = vpop.f32.mrb[5].mxu0  ;;  %v815_v31 = vpop.f32.mrb[5].mxu1 }
 0x105   : > { %v623_v32 = vadd.f32 %v622_v30, %v1867_v58  ;;  %v816_v33 = vadd.f32 %v815_v31, %v1869_v59  ;;  %v624_v34 = vpop.f32.mrb[6].mxu0  ;;  %v817_v35 = vpop.f32.mrb[6].mxu1  ;;  %1407 = vmatprep.subr.bf16.mxu0 %v1406_v24  ;;  %1471 = vmatprep.subr.bf16.mxu1 %v1470_v25 }
 0x106   : > { %v625_v36 = vadd.f32 %v624_v34, %v1863_v56  ;;  %v818_v37 = vadd.f32 %v817_v35, %v1865_v57  ;;  %v626_v38 = vpop.f32.mrb[7].mxu0  ;;  %v819_v39 = vpop.f32.mrb[7].mxu1  ;;  %1409 = vmatpush1.bf16.msra.mxu0 %v1408_v22  ;;  %1473 = vmatpush1.bf16.msra.mxu1 %v1472_v23  ;;  %v970_v42 = vmax.f32 %v621_v28, 0.0  ;;  %v972_v43 = vmax.f32 %v814_v29, 0.0 }
 0x107   : > { %v627_v40 = vadd.f32 %v626_v38, %v1867_v58  ;;  %v820_v41 = vadd.f32 %v819_v39, %v1869_v59  ;;  %v971_v46 = vmax.f32 %v623_v32, 0.0  ;;  %v973_v47 = vmax.f32 %v816_v33, 0.0 }
 0x108   : > { %v974_v44 = vmax.f32 %v625_v36, 0.0  ;;  %v976_v45 = vmax.f32 %v818_v37, 0.0 }
 0x109   : > { %v975_v48 = vmax.f32 %v627_v40, 0.0  ;;  %v977_v52 = vmax.f32 %v820_v41, 0.0 }
 0x10a   : > { %v1412_v53 = vpack.c.bf16 %v974_v44, %v970_v42  ;;  %v1476_v54 = vpack.c.bf16 %v976_v45, %v972_v43 }
 0x10b   : > { %v1410_v55 = vpack.c.bf16 %v975_v48, %v971_v46  ;;  %v1474_v60 = vpack.c.bf16 %v977_v52, %v973_v47  ;;  %v630_v61 = vpop.f32.mrb[8].mxu0  ;;  %v823_v62 = vpop.f32.mrb[8].mxu1 }
 0x10c   : > { %v631_v63 = vadd.f32 %v630_v61, %v1863_v56  ;;  %v824_v0 = vadd.f32 %v823_v62, %v1865_v57  ;;  %v632_v1 = vpop.f32.mrb[9].mxu0  ;;  %v825_v2 = vpop.f32.mrb[9].mxu1 }
 0x10d   : > { %v633_v3 = vadd.f32 %v632_v1, %v1867_v58  ;;  %v826_v4 = vadd.f32 %v825_v2, %v1869_v59  ;;  %v634_v5 = vpop.f32.mrb[10].mxu0  ;;  %v827_v7 = vpop.f32.mrb[10].mxu1  ;;  %1411 = vmatprep.subr.bf16.mxu0 %v1410_v55  ;;  %1475 = vmatprep.subr.bf16.mxu1 %v1474_v60 }
 0x10e   : > { %v635_v8 = vadd.f32 %v634_v5, %v1863_v56  ;;  %v828_v9 = vadd.f32 %v827_v7, %v1865_v57  ;;  %v636_v10 = vpop.f32.mrb[11].mxu0  ;;  %v829_v11 = vpop.f32.mrb[11].mxu1  ;;  %1413 = vmatpush1.bf16.msra.mxu0 %v1412_v53  ;;  %1477 = vmatpush1.bf16.msra.mxu1 %v1476_v54  ;;  %v978_v14 = vmax.f32 %v631_v63, 0.0  ;;  %v980_v15 = vmax.f32 %v824_v0, 0.0 }
 0x10f   : > { %v637_v12 = vadd.f32 %v636_v10, %v1867_v58  ;;  %v830_v13 = vadd.f32 %v829_v11, %v1869_v59  ;;  %v979_v18 = vmax.f32 %v633_v3, 0.0  ;;  %v981_v19 = vmax.f32 %v826_v4, 0.0 }
 0x110   : > { %v982_v16 = vmax.f32 %v635_v8, 0.0  ;;  %v984_v17 = vmax.f32 %v828_v9, 0.0 }
 0x111   : > { %v983_v20 = vmax.f32 %v637_v12, 0.0  ;;  %v985_v21 = vmax.f32 %v830_v13, 0.0 }
 0x112   : > { %v1416_v22 = vpack.c.bf16 %v982_v16, %v978_v14  ;;  %v1480_v23 = vpack.c.bf16 %v984_v17, %v980_v15 }
 0x113   : > { %v1414_v24 = vpack.c.bf16 %v983_v20, %v979_v18  ;;  %v1478_v25 = vpack.c.bf16 %v985_v21, %v981_v19  ;;  %v640_v26 = vpop.f32.mrb[12].mxu0  ;;  %v833_v27 = vpop.f32.mrb[12].mxu1 }
 0x114   : > { %v641_v28 = vadd.f32 %v640_v26, %v1863_v56  ;;  %v834_v29 = vadd.f32 %v833_v27, %v1865_v57  ;;  %v642_v30 = vpop.f32.mrb[13].mxu0  ;;  %v835_v31 = vpop.f32.mrb[13].mxu1 }
 0x115   : > { %v643_v32 = vadd.f32 %v642_v30, %v1867_v58  ;;  %v836_v33 = vadd.f32 %v835_v31, %v1869_v59  ;;  %v644_v34 = vpop.f32.mrb[14].mxu0  ;;  %v837_v35 = vpop.f32.mrb[14].mxu1  ;;  %1415 = vmatprep.subr.bf16.mxu0 %v1414_v24  ;;  %1479 = vmatprep.subr.bf16.mxu1 %v1478_v25 }
 0x116   : > { %v645_v36 = vadd.f32 %v644_v34, %v1863_v56  ;;  %v838_v37 = vadd.f32 %v837_v35, %v1865_v57  ;;  %v646_v38 = vpop.f32.mrb[15].mxu0  ;;  %v839_v39 = vpop.f32.mrb[15].mxu1  ;;  %1417 = vmatpush1.bf16.msra.mxu0 %v1416_v22  ;;  %1481 = vmatpush1.bf16.msra.mxu1 %v1480_v23  ;;  %v986_v42 = vmax.f32 %v641_v28, 0.0  ;;  %v988_v43 = vmax.f32 %v834_v29, 0.0 }
 0x117   : > { %v647_v40 = vadd.f32 %v646_v38, %v1867_v58  ;;  %v840_v41 = vadd.f32 %v839_v39, %v1869_v59  ;;  %v987_v46 = vmax.f32 %v643_v32, 0.0  ;;  %v989_v47 = vmax.f32 %v836_v33, 0.0 }
 0x118   : > { %v990_v44 = vmax.f32 %v645_v36, 0.0  ;;  %v992_v45 = vmax.f32 %v838_v37, 0.0 }
 0x119   : > { %v991_v48 = vmax.f32 %v647_v40, 0.0  ;;  %v993_v52 = vmax.f32 %v840_v41, 0.0 }
 0x11a   : > { %v1420_v53 = vpack.c.bf16 %v990_v44, %v986_v42  ;;  %v1484_v54 = vpack.c.bf16 %v992_v45, %v988_v43 }
 0x11b   : > { %v1418_v55 = vpack.c.bf16 %v991_v48, %v987_v46  ;;  %v1482_v60 = vpack.c.bf16 %v993_v52, %v989_v47  ;;  %v650_v61 = vpop.f32.mrb[16].mxu0  ;;  %v843_v62 = vpop.f32.mrb[16].mxu1 }
 0x11c   : > { %v651_v63 = vadd.f32 %v650_v61, %v1863_v56  ;;  %v844_v0 = vadd.f32 %v843_v62, %v1865_v57  ;;  %v652_v1 = vpop.f32.mrb[17].mxu0  ;;  %v845_v2 = vpop.f32.mrb[17].mxu1 }
 0x11d   : > { %v653_v3 = vadd.f32 %v652_v1, %v1867_v58  ;;  %v846_v4 = vadd.f32 %v845_v2, %v1869_v59  ;;  %v654_v5 = vpop.f32.mrb[18].mxu0  ;;  %v847_v7 = vpop.f32.mrb[18].mxu1  ;;  %1419 = vmatprep.subr.bf16.mxu0 %v1418_v55  ;;  %1483 = vmatprep.subr.bf16.mxu1 %v1482_v60 }
 0x11e   : > { %v655_v8 = vadd.f32 %v654_v5, %v1863_v56  ;;  %v848_v9 = vadd.f32 %v847_v7, %v1865_v57  ;;  %v656_v10 = vpop.f32.mrb[19].mxu0  ;;  %v849_v11 = vpop.f32.mrb[19].mxu1  ;;  %1421 = vmatpush1.bf16.msra.mxu0 %v1420_v53  ;;  %1485 = vmatpush1.bf16.msra.mxu1 %v1484_v54  ;;  %v994_v14 = vmax.f32 %v651_v63, 0.0  ;;  %v996_v15 = vmax.f32 %v844_v0, 0.0 }
 0x11f   : > { %v657_v12 = vadd.f32 %v656_v10, %v1867_v58  ;;  %v850_v13 = vadd.f32 %v849_v11, %v1869_v59  ;;  %v995_v18 = vmax.f32 %v653_v3, 0.0  ;;  %v997_v19 = vmax.f32 %v846_v4, 0.0 }
 0x120   : > { %v998_v16 = vmax.f32 %v655_v8, 0.0  ;;  %v1000_v17 = vmax.f32 %v848_v9, 0.0 }
 0x121   : > { %v999_v20 = vmax.f32 %v657_v12, 0.0  ;;  %v1001_v21 = vmax.f32 %v850_v13, 0.0 }
 0x122   : > { %v1424_v22 = vpack.c.bf16 %v998_v16, %v994_v14  ;;  %v1488_v23 = vpack.c.bf16 %v1000_v17, %v996_v15 }
 0x123   : > { %v1422_v24 = vpack.c.bf16 %v999_v20, %v995_v18  ;;  %v1486_v25 = vpack.c.bf16 %v1001_v21, %v997_v19  ;;  %v660_v26 = vpop.f32.mrb[20].mxu0  ;;  %v853_v27 = vpop.f32.mrb[20].mxu1 }
 0x124   : > { %v661_v28 = vadd.f32 %v660_v26, %v1863_v56  ;;  %v854_v29 = vadd.f32 %v853_v27, %v1865_v57  ;;  %v662_v30 = vpop.f32.mrb[21].mxu0  ;;  %v855_v31 = vpop.f32.mrb[21].mxu1 }
 0x125   : > { %v663_v32 = vadd.f32 %v662_v30, %v1867_v58  ;;  %v856_v33 = vadd.f32 %v855_v31, %v1869_v59  ;;  %v664_v34 = vpop.f32.mrb[22].mxu0  ;;  %v857_v35 = vpop.f32.mrb[22].mxu1  ;;  %1423 = vmatprep.subr.bf16.mxu0 %v1422_v24  ;;  %1487 = vmatprep.subr.bf16.mxu1 %v1486_v25 }
 0x126   : > { %v665_v36 = vadd.f32 %v664_v34, %v1863_v56  ;;  %v858_v37 = vadd.f32 %v857_v35, %v1865_v57  ;;  %v666_v38 = vpop.f32.mrb[23].mxu0  ;;  %v859_v39 = vpop.f32.mrb[23].mxu1  ;;  %1425 = vmatpush1.bf16.msra.mxu0 %v1424_v22  ;;  %1489 = vmatpush1.bf16.msra.mxu1 %v1488_v23  ;;  %v1002_v42 = vmax.f32 %v661_v28, 0.0  ;;  %v1004_v43 = vmax.f32 %v854_v29, 0.0 }
 0x127   : > { %v667_v40 = vadd.f32 %v666_v38, %v1867_v58  ;;  %v860_v41 = vadd.f32 %v859_v39, %v1869_v59  ;;  %v1003_v46 = vmax.f32 %v663_v32, 0.0  ;;  %v1005_v47 = vmax.f32 %v856_v33, 0.0 }
 0x128   : > { %v1006_v44 = vmax.f32 %v665_v36, 0.0  ;;  %v1008_v45 = vmax.f32 %v858_v37, 0.0 }
 0x129   : > { %v1007_v48 = vmax.f32 %v667_v40, 0.0  ;;  %v1009_v52 = vmax.f32 %v860_v41, 0.0 }
 0x12a   : > { %v1428_v53 = vpack.c.bf16 %v1006_v44, %v1002_v42  ;;  %v1492_v54 = vpack.c.bf16 %v1008_v45, %v1004_v43 }
 0x12b   : > { %v1426_v55 = vpack.c.bf16 %v1007_v48, %v1003_v46  ;;  %v1490_v60 = vpack.c.bf16 %v1009_v52, %v1005_v47  ;;  %v670_v61 = vpop.f32.mrb[24].mxu0  ;;  %v863_v62 = vpop.f32.mrb[24].mxu1 }
 0x12c   : > { %v671_v63 = vadd.f32 %v670_v61, %v1863_v56  ;;  %v864_v0 = vadd.f32 %v863_v62, %v1865_v57  ;;  %v672_v1 = vpop.f32.mrb[25].mxu0  ;;  %v865_v2 = vpop.f32.mrb[25].mxu1 }
 0x12d   : > { %v673_v3 = vadd.f32 %v672_v1, %v1867_v58  ;;  %v866_v4 = vadd.f32 %v865_v2, %v1869_v59  ;;  %v674_v5 = vpop.f32.mrb[26].mxu0  ;;  %v867_v7 = vpop.f32.mrb[26].mxu1  ;;  %1427 = vmatprep.subr.bf16.mxu0 %v1426_v55  ;;  %1491 = vmatprep.subr.bf16.mxu1 %v1490_v60 }
 0x12e   : > { %v675_v8 = vadd.f32 %v674_v5, %v1863_v56  ;;  %v868_v9 = vadd.f32 %v867_v7, %v1865_v57  ;;  %v676_v10 = vpop.f32.mrb[27].mxu0  ;;  %v869_v11 = vpop.f32.mrb[27].mxu1  ;;  %1429 = vmatpush1.bf16.msra.mxu0 %v1428_v53  ;;  %1493 = vmatpush1.bf16.msra.mxu1 %v1492_v54  ;;  %v1010_v14 = vmax.f32 %v671_v63, 0.0  ;;  %v1012_v15 = vmax.f32 %v864_v0, 0.0 }
 0x12f   : > { %v677_v12 = vadd.f32 %v676_v10, %v1867_v58  ;;  %v870_v13 = vadd.f32 %v869_v11, %v1869_v59  ;;  %v1011_v18 = vmax.f32 %v673_v3, 0.0  ;;  %v1013_v19 = vmax.f32 %v866_v4, 0.0 }
 0x130   : > { %v1014_v16 = vmax.f32 %v675_v8, 0.0  ;;  %v1016_v17 = vmax.f32 %v868_v9, 0.0 }
 0x131   : > { %v1015_v20 = vmax.f32 %v677_v12, 0.0  ;;  %v1017_v21 = vmax.f32 %v870_v13, 0.0 }
 0x132   : > { %v1432_v22 = vpack.c.bf16 %v1014_v16, %v1010_v14  ;;  %v1496_v23 = vpack.c.bf16 %v1016_v17, %v1012_v15 }
 0x133   : > { %v1430_v24 = vpack.c.bf16 %v1015_v20, %v1011_v18  ;;  %v1494_v25 = vpack.c.bf16 %v1017_v21, %v1013_v19  ;;  %v680_v26 = vpop.f32.mrb[28].mxu0  ;;  %v873_v27 = vpop.f32.mrb[28].mxu1 }
 0x134   : > { %v681_v28 = vadd.f32 %v680_v26, %v1863_v56  ;;  %v874_v29 = vadd.f32 %v873_v27, %v1865_v57  ;;  %v682_v30 = vpop.f32.mrb[29].mxu0  ;;  %v875_v31 = vpop.f32.mrb[29].mxu1 }
 0x135   : > { %v683_v32 = vadd.f32 %v682_v30, %v1867_v58  ;;  %v876_v33 = vadd.f32 %v875_v31, %v1869_v59  ;;  %v684_v34 = vpop.f32.mrb[30].mxu0  ;;  %v877_v35 = vpop.f32.mrb[30].mxu1  ;;  %1431 = vmatprep.subr.bf16.mxu0 %v1430_v24  ;;  %1495 = vmatprep.subr.bf16.mxu1 %v1494_v25 }
 0x136   : > { %v685_v36 = vadd.f32 %v684_v34, %v1863_v56  ;;  %v878_v37 = vadd.f32 %v877_v35, %v1865_v57  ;;  %v686_v38 = vpop.f32.mrb[31].mxu0  ;;  %v879_v39 = vpop.f32.mrb[31].mxu1  ;;  %1433 = vmatpush1.bf16.msra.mxu0 %v1432_v22  ;;  %1497 = vmatpush1.bf16.msra.mxu1 %v1496_v23  ;;  %v1018_v42 = vmax.f32 %v681_v28, 0.0  ;;  %v1020_v43 = vmax.f32 %v874_v29, 0.0 }
 0x137   : > { %v687_v40 = vadd.f32 %v686_v38, %v1867_v58  ;;  %v880_v41 = vadd.f32 %v879_v39, %v1869_v59  ;;  %v1019_v46 = vmax.f32 %v683_v32, 0.0  ;;  %v1021_v47 = vmax.f32 %v876_v33, 0.0 }
 0x138   : > { %v1022_v44 = vmax.f32 %v685_v36, 0.0  ;;  %v1024_v45 = vmax.f32 %v878_v37, 0.0 }
 0x139   : > { %v1023_v48 = vmax.f32 %v687_v40, 0.0  ;;  %v1025_v52 = vmax.f32 %v880_v41, 0.0 }
 0x13a   : > { %v1436_v53 = vpack.c.bf16 %v1022_v44, %v1018_v42  ;;  %v1500_v54 = vpack.c.bf16 %v1024_v45, %v1020_v43 }
 0x13b   : > { %v1434_v55 = vpack.c.bf16 %v1023_v48, %v1019_v46  ;;  %v1498_v60 = vpack.c.bf16 %v1025_v52, %v1021_v47  ;;  %v690_v61 = vpop.f32.mrb[32].mxu0  ;;  %v883_v62 = vpop.f32.mrb[32].mxu1 }
 0x13c   : > { %v691_v63 = vadd.f32 %v690_v61, %v1863_v56  ;;  %v884_v0 = vadd.f32 %v883_v62, %v1865_v57  ;;  %v692_v1 = vpop.f32.mrb[33].mxu0  ;;  %v885_v2 = vpop.f32.mrb[33].mxu1 }
 0x13d   : > { %v693_v3 = vadd.f32 %v692_v1, %v1867_v58  ;;  %v886_v4 = vadd.f32 %v885_v2, %v1869_v59  ;;  %v694_v5 = vpop.f32.mrb[34].mxu0  ;;  %v887_v7 = vpop.f32.mrb[34].mxu1  ;;  %1435 = vmatprep.subr.bf16.mxu0 %v1434_v55  ;;  %1499 = vmatprep.subr.bf16.mxu1 %v1498_v60 }
 0x13e   : > { %v695_v8 = vadd.f32 %v694_v5, %v1863_v56  ;;  %v888_v9 = vadd.f32 %v887_v7, %v1865_v57  ;;  %v696_v10 = vpop.f32.mrb[35].mxu0  ;;  %v889_v11 = vpop.f32.mrb[35].mxu1  ;;  %1437 = vmatpush1.bf16.msra.mxu0 %v1436_v53  ;;  %1501 = vmatpush1.bf16.msra.mxu1 %v1500_v54  ;;  %v1026_v14 = vmax.f32 %v691_v63, 0.0  ;;  %v1028_v15 = vmax.f32 %v884_v0, 0.0 }
 0x13f   : > { %v697_v12 = vadd.f32 %v696_v10, %v1867_v58  ;;  %v890_v13 = vadd.f32 %v889_v11, %v1869_v59  ;;  %v1027_v18 = vmax.f32 %v693_v3, 0.0  ;;  %v1029_v19 = vmax.f32 %v886_v4, 0.0 }
 0x140   : > { %v1030_v16 = vmax.f32 %v695_v8, 0.0  ;;  %v1032_v17 = vmax.f32 %v888_v9, 0.0 }
 0x141   : > { %v1031_v20 = vmax.f32 %v697_v12, 0.0  ;;  %v1033_v21 = vmax.f32 %v890_v13, 0.0 }
 0x142   : > { %v1440_v22 = vpack.c.bf16 %v1030_v16, %v1026_v14  ;;  %v1504_v23 = vpack.c.bf16 %v1032_v17, %v1028_v15 }
 0x143   : > { %v1438_v24 = vpack.c.bf16 %v1031_v20, %v1027_v18  ;;  %v1502_v25 = vpack.c.bf16 %v1033_v21, %v1029_v19  ;;  %v700_v26 = vpop.f32.mrb[36].mxu0  ;;  %v893_v27 = vpop.f32.mrb[36].mxu1 }
 0x144   : > { %v701_v28 = vadd.f32 %v700_v26, %v1863_v56  ;;  %v894_v29 = vadd.f32 %v893_v27, %v1865_v57  ;;  %v702_v30 = vpop.f32.mrb[37].mxu0  ;;  %v895_v31 = vpop.f32.mrb[37].mxu1 }
 0x145   : > { %v703_v32 = vadd.f32 %v702_v30, %v1867_v58  ;;  %v896_v33 = vadd.f32 %v895_v31, %v1869_v59  ;;  %v704_v34 = vpop.f32.mrb[38].mxu0  ;;  %v897_v35 = vpop.f32.mrb[38].mxu1  ;;  %1439 = vmatprep.subr.bf16.mxu0 %v1438_v24  ;;  %1503 = vmatprep.subr.bf16.mxu1 %v1502_v25 }
 0x146   : > { %v705_v36 = vadd.f32 %v704_v34, %v1863_v56  ;;  %v898_v37 = vadd.f32 %v897_v35, %v1865_v57  ;;  %v706_v38 = vpop.f32.mrb[39].mxu0  ;;  %v899_v39 = vpop.f32.mrb[39].mxu1  ;;  %1441 = vmatpush1.bf16.msra.mxu0 %v1440_v22  ;;  %1505 = vmatpush1.bf16.msra.mxu1 %v1504_v23  ;;  %v1034_v42 = vmax.f32 %v701_v28, 0.0  ;;  %v1036_v43 = vmax.f32 %v894_v29, 0.0 }
 0x147   : > { %v707_v40 = vadd.f32 %v706_v38, %v1867_v58  ;;  %v900_v41 = vadd.f32 %v899_v39, %v1869_v59  ;;  %v1035_v46 = vmax.f32 %v703_v32, 0.0  ;;  %v1037_v47 = vmax.f32 %v896_v33, 0.0 }
 0x148   : > { %v1038_v44 = vmax.f32 %v705_v36, 0.0  ;;  %v1040_v45 = vmax.f32 %v898_v37, 0.0 }
 0x149   : > { %v1039_v48 = vmax.f32 %v707_v40, 0.0  ;;  %v1041_v52 = vmax.f32 %v900_v41, 0.0 }
 0x14a   : > { %v1444_v53 = vpack.c.bf16 %v1038_v44, %v1034_v42  ;;  %v1508_v54 = vpack.c.bf16 %v1040_v45, %v1036_v43 }
 0x14b   : > { %v1442_v55 = vpack.c.bf16 %v1039_v48, %v1035_v46  ;;  %v1506_v60 = vpack.c.bf16 %v1041_v52, %v1037_v47  ;;  %v710_v61 = vpop.f32.mrb[40].mxu0  ;;  %v903_v62 = vpop.f32.mrb[40].mxu1 }
 0x14c   : > { %v711_v63 = vadd.f32 %v710_v61, %v1863_v56  ;;  %v904_v0 = vadd.f32 %v903_v62, %v1865_v57  ;;  %v712_v1 = vpop.f32.mrb[41].mxu0  ;;  %v905_v2 = vpop.f32.mrb[41].mxu1 }
 0x14d   : > { %v713_v3 = vadd.f32 %v712_v1, %v1867_v58  ;;  %v906_v4 = vadd.f32 %v905_v2, %v1869_v59  ;;  %v714_v5 = vpop.f32.mrb[42].mxu0  ;;  %v907_v7 = vpop.f32.mrb[42].mxu1  ;;  %1443 = vmatprep.subr.bf16.mxu0 %v1442_v55  ;;  %1507 = vmatprep.subr.bf16.mxu1 %v1506_v60 }
 0x14e   : > { %v715_v8 = vadd.f32 %v714_v5, %v1863_v56  ;;  %v908_v9 = vadd.f32 %v907_v7, %v1865_v57  ;;  %v716_v10 = vpop.f32.mrb[43].mxu0  ;;  %v909_v11 = vpop.f32.mrb[43].mxu1  ;;  %1445 = vmatpush1.bf16.msra.mxu0 %v1444_v53  ;;  %1509 = vmatpush1.bf16.msra.mxu1 %v1508_v54  ;;  %v1042_v14 = vmax.f32 %v711_v63, 0.0  ;;  %v1044_v15 = vmax.f32 %v904_v0, 0.0 }
 0x14f   : > { %v717_v12 = vadd.f32 %v716_v10, %v1867_v58  ;;  %v910_v13 = vadd.f32 %v909_v11, %v1869_v59  ;;  %v1043_v18 = vmax.f32 %v713_v3, 0.0  ;;  %v1045_v19 = vmax.f32 %v906_v4, 0.0 }
 0x150   : > { %v1046_v16 = vmax.f32 %v715_v8, 0.0  ;;  %v1048_v17 = vmax.f32 %v908_v9, 0.0 }
 0x151   : > { %v1047_v20 = vmax.f32 %v717_v12, 0.0  ;;  %v1049_v21 = vmax.f32 %v910_v13, 0.0 }
 0x152   : > { %v1448_v22 = vpack.c.bf16 %v1046_v16, %v1042_v14  ;;  %v1512_v23 = vpack.c.bf16 %v1048_v17, %v1044_v15 }
 0x153   : > { %v1446_v24 = vpack.c.bf16 %v1047_v20, %v1043_v18  ;;  %v1510_v25 = vpack.c.bf16 %v1049_v21, %v1045_v19  ;;  %v720_v26 = vpop.f32.mrb[44].mxu0  ;;  %v913_v27 = vpop.f32.mrb[44].mxu1 }
 0x154   : > { %v721_v28 = vadd.f32 %v720_v26, %v1863_v56  ;;  %v914_v29 = vadd.f32 %v913_v27, %v1865_v57  ;;  %v722_v30 = vpop.f32.mrb[45].mxu0  ;;  %v915_v31 = vpop.f32.mrb[45].mxu1 }
 0x155   : > { %v723_v32 = vadd.f32 %v722_v30, %v1867_v58  ;;  %v916_v33 = vadd.f32 %v915_v31, %v1869_v59  ;;  %v724_v34 = vpop.f32.mrb[46].mxu0  ;;  %v917_v35 = vpop.f32.mrb[46].mxu1  ;;  %1447 = vmatprep.subr.bf16.mxu0 %v1446_v24  ;;  %1511 = vmatprep.subr.bf16.mxu1 %v1510_v25 }
 0x156   : > { %v725_v36 = vadd.f32 %v724_v34, %v1863_v56  ;;  %v918_v37 = vadd.f32 %v917_v35, %v1865_v57  ;;  %v726_v38 = vpop.f32.mrb[47].mxu0  ;;  %v919_v39 = vpop.f32.mrb[47].mxu1  ;;  %1449 = vmatpush1.bf16.msra.mxu0 %v1448_v22  ;;  %1513 = vmatpush1.bf16.msra.mxu1 %v1512_v23  ;;  %v1050_v42 = vmax.f32 %v721_v28, 0.0  ;;  %v1052_v43 = vmax.f32 %v914_v29, 0.0 }
 0x157   : > { %v727_v40 = vadd.f32 %v726_v38, %v1867_v58  ;;  %v920_v41 = vadd.f32 %v919_v39, %v1869_v59  ;;  %v1051_v46 = vmax.f32 %v723_v32, 0.0  ;;  %v1053_v47 = vmax.f32 %v916_v33, 0.0 }
 0x158   : > { %v1054_v44 = vmax.f32 %v725_v36, 0.0  ;;  %v1056_v45 = vmax.f32 %v918_v37, 0.0 }
 0x159   : > { %v1055_v48 = vmax.f32 %v727_v40, 0.0  ;;  %v1057_v52 = vmax.f32 %v920_v41, 0.0 }
 0x15a   : > { %v1452_v53 = vpack.c.bf16 %v1054_v44, %v1050_v42  ;;  %v1516_v54 = vpack.c.bf16 %v1056_v45, %v1052_v43 }
 0x15b   : > { %v1450_v55 = vpack.c.bf16 %v1055_v48, %v1051_v46  ;;  %v1514_v60 = vpack.c.bf16 %v1057_v52, %v1053_v47  ;;  %v730_v61 = vpop.f32.mrb[48].mxu0  ;;  %v923_v62 = vpop.f32.mrb[48].mxu1 }
 0x15c   : > { %v731_v63 = vadd.f32 %v730_v61, %v1863_v56  ;;  %v924_v0 = vadd.f32 %v923_v62, %v1865_v57  ;;  %v732_v1 = vpop.f32.mrb[49].mxu0  ;;  %v925_v2 = vpop.f32.mrb[49].mxu1 }
 0x15d   : > { %v733_v3 = vadd.f32 %v732_v1, %v1867_v58  ;;  %v926_v4 = vadd.f32 %v925_v2, %v1869_v59  ;;  %v734_v5 = vpop.f32.mrb[50].mxu0  ;;  %v927_v7 = vpop.f32.mrb[50].mxu1  ;;  %1451 = vmatprep.subr.bf16.mxu0 %v1450_v55  ;;  %1515 = vmatprep.subr.bf16.mxu1 %v1514_v60 }
 0x15e   : > { %v735_v8 = vadd.f32 %v734_v5, %v1863_v56  ;;  %v928_v9 = vadd.f32 %v927_v7, %v1865_v57  ;;  %v736_v10 = vpop.f32.mrb[51].mxu0  ;;  %v929_v11 = vpop.f32.mrb[51].mxu1  ;;  %1453 = vmatpush1.bf16.msra.mxu0 %v1452_v53  ;;  %1517 = vmatpush1.bf16.msra.mxu1 %v1516_v54  ;;  %v1058_v14 = vmax.f32 %v731_v63, 0.0  ;;  %v1060_v15 = vmax.f32 %v924_v0, 0.0 }
 0x15f   : > { %v737_v12 = vadd.f32 %v736_v10, %v1867_v58  ;;  %v930_v13 = vadd.f32 %v929_v11, %v1869_v59  ;;  %v1059_v18 = vmax.f32 %v733_v3, 0.0  ;;  %v1061_v19 = vmax.f32 %v926_v4, 0.0 }
 0x160   : > { %v1062_v16 = vmax.f32 %v735_v8, 0.0  ;;  %v1064_v17 = vmax.f32 %v928_v9, 0.0 }
 0x161   : > { %v1063_v20 = vmax.f32 %v737_v12, 0.0  ;;  %v1065_v21 = vmax.f32 %v930_v13, 0.0 }
 0x162   : > { %v1456_v22 = vpack.c.bf16 %v1062_v16, %v1058_v14  ;;  %v1520_v23 = vpack.c.bf16 %v1064_v17, %v1060_v15 }
 0x163   : > { %v1454_v24 = vpack.c.bf16 %v1063_v20, %v1059_v18  ;;  %v1518_v25 = vpack.c.bf16 %v1065_v21, %v1061_v19  ;;  %v740_v26 = vpop.f32.mrb[52].mxu0  ;;  %v933_v27 = vpop.f32.mrb[52].mxu1 }
 0x164   : > { %v741_v28 = vadd.f32 %v740_v26, %v1863_v56  ;;  %v934_v29 = vadd.f32 %v933_v27, %v1865_v57  ;;  %v742_v30 = vpop.f32.mrb[53].mxu0  ;;  %v935_v31 = vpop.f32.mrb[53].mxu1 }
 0x165   : > { %v743_v32 = vadd.f32 %v742_v30, %v1867_v58  ;;  %v936_v33 = vadd.f32 %v935_v31, %v1869_v59  ;;  %v744_v34 = vpop.f32.mrb[54].mxu0  ;;  %v937_v35 = vpop.f32.mrb[54].mxu1  ;;  %1455 = vmatprep.subr.bf16.mxu0 %v1454_v24  ;;  %1519 = vmatprep.subr.bf16.mxu1 %v1518_v25 }
 0x166   : > { %v745_v36 = vadd.f32 %v744_v34, %v1863_v56  ;;  %v938_v37 = vadd.f32 %v937_v35, %v1865_v57  ;;  %v746_v38 = vpop.f32.mrb[55].mxu0  ;;  %v939_v39 = vpop.f32.mrb[55].mxu1  ;;  %1457 = vmatpush1.bf16.msra.mxu0 %v1456_v22  ;;  %1521 = vmatpush1.bf16.msra.mxu1 %v1520_v23  ;;  %v1066_v42 = vmax.f32 %v741_v28, 0.0  ;;  %v1068_v43 = vmax.f32 %v934_v29, 0.0 }
 0x167   : > { %v747_v40 = vadd.f32 %v746_v38, %v1867_v58  ;;  %v940_v41 = vadd.f32 %v939_v39, %v1869_v59  ;;  %v1067_v46 = vmax.f32 %v743_v32, 0.0  ;;  %v1069_v47 = vmax.f32 %v936_v33, 0.0 }
 0x168   : > { %v1070_v44 = vmax.f32 %v745_v36, 0.0  ;;  %v1072_v45 = vmax.f32 %v938_v37, 0.0 }
 0x169   : > { %v1071_v48 = vmax.f32 %v747_v40, 0.0  ;;  %v1073_v52 = vmax.f32 %v940_v41, 0.0 }
 0x16a   : > { %v1460_v53 = vpack.c.bf16 %v1070_v44, %v1066_v42  ;;  %v1524_v54 = vpack.c.bf16 %v1072_v45, %v1068_v43 }
 0x16b   : > { %v1458_v55 = vpack.c.bf16 %v1071_v48, %v1067_v46  ;;  %v1522_v60 = vpack.c.bf16 %v1073_v52, %v1069_v47  ;;  %v750_v61 = vpop.f32.mrb[56].mxu0  ;;  %v943_v62 = vpop.f32.mrb[56].mxu1 }
 0x16c   : > { %v751_v63 = vadd.f32 %v750_v61, %v1863_v56  ;;  %v944_v0 = vadd.f32 %v943_v62, %v1865_v57  ;;  %v752_v1 = vpop.f32.mrb[57].mxu0  ;;  %v945_v2 = vpop.f32.mrb[57].mxu1 }
 0x16d   : > { %v753_v3 = vadd.f32 %v752_v1, %v1867_v58  ;;  %v946_v4 = vadd.f32 %v945_v2, %v1869_v59  ;;  %v754_v5 = vpop.f32.mrb[58].mxu0  ;;  %v947_v7 = vpop.f32.mrb[58].mxu1  ;;  %1459 = vmatprep.subr.bf16.mxu0 %v1458_v55  ;;  %1523 = vmatprep.subr.bf16.mxu1 %v1522_v60  ;;  %v1650_v55 = vmov 0.0   ;;  %v1651_v60 = vmov 1966171168  }
 0x16e   : > { %v755_v8 = vadd.f32 %v754_v5, %v1863_v56  ;;  %v948_v9 = vadd.f32 %v947_v7, %v1865_v57  ;;  %v756_v10 = vpop.f32.mrb[59].mxu0  ;;  %v949_v11 = vpop.f32.mrb[59].mxu1  ;;  %1461 = vmatpush1.bf16.msra.mxu0 %v1460_v53  ;;  %1525 = vmatpush1.bf16.msra.mxu1 %v1524_v54  ;;  %v1074_v14 = vmax.f32 %v751_v63, 0.0  ;;  %v1076_v15 = vmax.f32 %v944_v0, 0.0  ;;  %233 = vst.msk [vmem:[%s223_s28] sm:$0xf] %vm2013_vm0, %v1650_v55 }
 0x16f   : > { %v757_v12 = vadd.f32 %v756_v10, %v1867_v58  ;;  %v950_v13 = vadd.f32 %v949_v11, %v1869_v59  ;;  %v1075_v18 = vmax.f32 %v753_v3, 0.0  ;;  %v1077_v19 = vmax.f32 %v946_v4, 0.0 }
 0x170   : > { %v1078_v16 = vmax.f32 %v755_v8, 0.0  ;;  %v1080_v17 = vmax.f32 %v948_v9, 0.0 }
 0x171   : > { %v1079_v20 = vmax.f32 %v757_v12, 0.0  ;;  %v1081_v21 = vmax.f32 %v950_v13, 0.0 }
 0x172   : > { %v1464_v22 = vpack.c.bf16 %v1078_v16, %v1074_v14  ;;  %v1528_v23 = vpack.c.bf16 %v1080_v17, %v1076_v15 }
 0x173   : > { %v1462_v24 = vpack.c.bf16 %v1079_v20, %v1075_v18  ;;  %v1526_v25 = vpack.c.bf16 %v1081_v21, %v1077_v19  ;;  %v760_v26 = vpop.f32.mrb[60].mxu0  ;;  %v953_v27 = vpop.f32.mrb[60].mxu1 }
 0x174   : > { %v761_v28 = vadd.f32 %v760_v26, %v1863_v56  ;;  %v954_v29 = vadd.f32 %v953_v27, %v1865_v57  ;;  %v762_v30 = vpop.f32.mrb[61].mxu0  ;;  %v955_v31 = vpop.f32.mrb[61].mxu1 }
 0x175   : > { %v763_v32 = vadd.f32 %v762_v30, %v1867_v58  ;;  %v956_v33 = vadd.f32 %v955_v31, %v1869_v59  ;;  %v764_v34 = vpop.f32.mrb[62].mxu0  ;;  %v957_v35 = vpop.f32.mrb[62].mxu1  ;;  %1463 = vmatprep.subr.bf16.mxu0 %v1462_v24  ;;  %1527 = vmatprep.subr.bf16.mxu1 %v1526_v25  ;;  %v1090_v7 = vld [vmem:[%s223_s28] sm:$0xf] }
 0x176   : > { %v765_v36 = vadd.f32 %v764_v34, %v1863_v56  ;;  %v958_v37 = vadd.f32 %v957_v35, %v1865_v57  ;;  %v766_v38 = vpop.f32.mrb[63].mxu0  ;;  %v959_v39 = vpop.f32.mrb[63].mxu1  ;;  %1465 = vmatpush1.bf16.msra.mxu0 %v1464_v22  ;;  %1529 = vmatpush1.bf16.msra.mxu1 %v1528_v23  ;;  %v1082_v42 = vmax.f32 %v761_v28, 0.0  ;;  %v1084_v43 = vmax.f32 %v954_v29, 0.0 }
 0x177   : > { %v767_v40 = vadd.f32 %v766_v38, %v1867_v58  ;;  %v960_v41 = vadd.f32 %v959_v39, %v1869_v59  ;;  %v1083_v46 = vmax.f32 %v763_v32, 0.0  ;;  %v1085_v47 = vmax.f32 %v956_v33, 0.0 }
 0x178   : > { %v1086_v44 = vmax.f32 %v765_v36, 0.0  ;;  %v1088_v45 = vmax.f32 %v958_v37, 0.0  ;;  %v1096_v58 = vrot.slane %v1878_v6, %v302_v51  ;;  %v1252_v51 = vunpack.c.l.s4 %v1651_v60 }
 0x179   : > { %v1087_v48 = vmax.f32 %v767_v40, 0.0  ;;  %v1089_v52 = vmax.f32 %v960_v41, 0.0 }
 0x17a   : > { %v1468_v56 = vpack.c.bf16 %v1086_v44, %v1082_v42  ;;  %v1532_v53 = vpack.c.bf16 %v1088_v45, %v1084_v43  ;;  %v1253_v6 = vunpack.c.0.s8 %v1252_v51 }
 0x17b   : > { %v1466_v57 = vpack.c.bf16 %v1087_v48, %v1083_v46  ;;  %v1530_v54 = vpack.c.bf16 %v1089_v52, %v1085_v47 }
 0x17c   : > { %v1256_v63 = vsub.s32 %v1253_v6, %v1852_v50 }
 0x17d   : > { %1467 = vmatprep.subr.bf16.mxu0 %v1466_v57  ;;  %1531 = vmatprep.subr.bf16.mxu1 %v1530_v54 }
 0x17e   : > { %1469 = vmatpush1.bf16.msra.mxu0 %v1468_v56  ;;  %1533 = vmatpush1.bf16.msra.mxu1 %v1532_v53 }
 0x181   : > { %1168 = vmatmul.mubr.f32.vlgmr.msra.gmra.mrb[64].mxu0 %v1096_v58  ;;  %1239 = vmatmul.mubr.f32.vlgmr.msra.gmra.mrb[64].mxu1 %v1096_v58 }
 0x254   : > { %v1169_v61 = vpop.f32.mrb[64].mxu0  ;;  %v1240_v62 = vpop.f32.mrb[64].mxu1 }
 0x255   : > { %v1171_v0 = vpop.f32.mrb[65].mxu0  ;;  %v1242_v1 = vpop.f32.mrb[65].mxu1 }
 0x256   : > { %v1249_v2 = vcombine.low %v1169_v61, %v1171_v0  ;;  %v1250_v3 = vcombine.low %v1240_v62, %v1242_v1 }
 0x258   : > { %v1257_v4 = vrot.slane %v1249_v2, %v1256_v63  ;;  %v1264_v49 = vrot.slane %v1250_v3, %v1256_v63 }
 0x25a   : > { %v1265_v5 = vcombine.low %v1257_v4, %v1264_v49 }
 0x25c   : > { %v1272_v8 = vrot.slane %v1265_v5, %v1256_v63 }
 0x25e   : > { %v1274_v9 = vadd.f32 %v1272_v8, %v1090_v7 }
 0x260   : > { %1279 = vst.msk [vmem:[%s223_s28] sm:$0xf] %vm2013_vm0, %v1274_v9 }
 0x261 PF: > { %s14_s17 = sadd.s32 1, %s1647_s17   ;;  %s2038_s15 = smov %s1643_s16 }
 0x262   : > { %p11_p5 = scmp.ge.s32.totalorder %s14_s17, 4   ;;  %s2039_s16 = smov %s2041_s18 }
 0x264   :  { %13 = sbr.rel (!%p11_p5) target bundleno = 2 (0x2), region = 70 }

</bundles_post_ra>
